<compile_context>
chip_gen: v5e
topology: v5e:2x2
jax: 0.10.0
libtpu: 0.0.40
codegen_flags: <defaults>
</compile_context>

<pallas_src>
import functools

import jax
import jax.numpy as jnp
import numpy as np
from jax.experimental import pallas as pl
from jax.experimental.pallas import tpu as pltpu


def _round_up(x, m):
    return (x + m - 1) // m * m


def _vmem_capacity_bytes():
    try:
        return int(pltpu.get_tpu_info().vmem_capacity_bytes)
    except Exception:
        return 64 * 1024 * 1024  # conservative fallback (v7x per-TC VMEM)


# ----------------------------- Pallas kernel -------------------------------

def _ffn_adapter_kernel(hid_ref, dbase_ref, obase_ref, wcat_ref, wul_ref,
                        out_ref, *, a_pad):
    """One (1, tm, H) tile of hidden states -> (1, tm, out) output tile.

    hid_ref:   (1, tm, H)          hidden-state rows
    dbase_ref: (1, 1, a_pad)       per-batch v/a + bd contribution (f32)
    obase_ref: (1, 1, out)         per-batch v/a + folded biases (f32)
    wcat_ref:  (H, a_pad + out)    [Wd_h (col-padded) | Wl_h]
    wul_ref:   (a_pad, out)        Wu @ Wl (row-padded with zeros)
    out_ref:   (1, tm, out)
    """
    h = hid_ref[0]                                                    # (tm, H)

    # Single fused hidden-side matmul: columns = [down-proj | out-proj].
    hw = jnp.dot(h, wcat_ref[...],
                 preferred_element_type=jnp.float32)                  # (tm, a_pad+out)

    d = hw[:, :a_pad] + dbase_ref[0]                                  # (tm, a_pad) f32
    s = jax.nn.sigmoid(d)

    # (s @ Wu) @ Wl folded to s @ (Wu @ Wl) -- exact identity.
    o = jnp.dot(s.astype(wul_ref.dtype), wul_ref[...],
                preferred_element_type=jnp.float32)                   # (tm, out)
    o = o + hw[:, a_pad:] + obase_ref[0]

    out_ref[0] = o.astype(out_ref.dtype)


def _ffn_adapter_pallas(hid, d_base, o_base, w_cat, wul, *, tm, out_dtype):
    """hid: (B, S_pad, H) with S_pad % tm == 0. Returns (B, S_pad, out)."""
    B, S_pad, H = hid.shape
    a_pad, out_dim = wul.shape
    assert S_pad % tm == 0
    assert w_cat.shape == (H, a_pad + out_dim)
    assert d_base.shape == (B, 1, a_pad)
    assert o_base.shape == (B, 1, out_dim)

    act_isz = jnp.dtype(hid.dtype).itemsize
    out_isz = jnp.dtype(out_dtype).itemsize
    w_isz = jnp.dtype(w_cat.dtype).itemsize

    # Generation-aware VMEM request: double-buffered activation blocks,
    # resident weights (conservatively counted double-buffered), f32
    # intermediates, plus margin -- capped at 3/4 of physical VMEM.
    blocks = 2 * tm * (H * act_isz + out_dim * out_isz)
    weights = 2 * (H * (a_pad + out_dim) + a_pad * out_dim) * w_isz
    interm = 2 * tm * (a_pad + out_dim) * 4
    bases = 2 * (a_pad + out_dim) * 4
    vmem_cap = _vmem_capacity_bytes()
    vmem_limit = int(min(min(100 << 20, vmem_cap * 3 // 4),
                         max(blocks + weights + interm + bases + (4 << 20),
                             16 << 20)))

    grid = (B, S_pad // tm)
    kernel = functools.partial(_ffn_adapter_kernel, a_pad=a_pad)

    return pl.pallas_call(
        kernel,
        out_shape=jax.ShapeDtypeStruct((B, S_pad, out_dim), out_dtype),
        grid_spec=pltpu.PrefetchScalarGridSpec(
            num_scalar_prefetch=0,
            grid=grid,
            in_specs=[
                pl.BlockSpec((1, tm, H), lambda b, s: (b, s, 0)),
                pl.BlockSpec((1, 1, a_pad), lambda b, s: (b, 0, 0)),
                pl.BlockSpec((1, 1, out_dim), lambda b, s: (b, 0, 0)),
                pl.BlockSpec((H, a_pad + out_dim), lambda b, s: (0, 0)),
                pl.BlockSpec((a_pad, out_dim), lambda b, s: (0, 0)),
            ],
            out_specs=pl.BlockSpec((1, tm, out_dim), lambda b, s: (b, s, 0)),
        ),
        compiler_params=pltpu.CompilerParams(
            dimension_semantics=("parallel", "parallel"),
            vmem_limit_bytes=vmem_limit),
    )(hid, d_base, o_base, w_cat, wul)


# --------------------------- Parameter preparation --------------------------

def prepare_ffn_adapter_params(params, hidden_size, d_vout, d_aout):
    """One-time weight prep: transpose, split off visual/acoustic rows, fold
    bu into the output bias, fold Wu into Wl, and fuse the hidden-side
    weights. Call once, reuse for every forward."""
    wd_t = jnp.asarray(params["wd"]).T          # (in_dim, A)
    wu_t = jnp.asarray(params["wu"]).T          # (A, in_dim)
    wl_t = jnp.asarray(params["wl"]).T          # (in_dim, out)
    H, dv, da = hidden_size, d_vout, d_aout
    in_dim, A = wd_t.shape
    out_dim = wl_t.shape[1]
    assert in_dim == H + dv + da
    a_pad = _round_up(A, 128)

    wd_h, wd_v, wd_a = wd_t[:H], wd_t[H:H + dv], wd_t[H + dv:]
    wl_h, wl_v, wl_a = wl_t[:H], wl_t[H:H + dv], wl_t[H + dv:]

    # Fold the up projection into the output projection (exact identity).
    wul = wu_t @ wl_t                             # (A, out)

    # Pad adapter columns to a 128-lane boundary so the in-kernel column
    # split of the fused h-matmul stays vreg-clean; padded sigmoid columns
    # multiply zero rows of wul -> contribute nothing.
    wd_h_p = jnp.pad(wd_h, ((0, 0), (0, a_pad - A)))
    wul_p = jnp.pad(wul, ((0, a_pad - A), (0, 0)))

    return {
        "w_cat": jnp.concatenate([wd_h_p, wl_h], axis=1),   # (H, a_pad + out)
        "wul": wul_p,                                        # (a_pad, out)
        "wd_v": wd_v, "wd_a": wd_a,                          # (dv, A), (da, A)
        "bd": jnp.asarray(params["bd"]),                     # (A,)
        "wl_v": wl_v, "wl_a": wl_a,                          # (dv, out), (da, out)
        # (up + h) @ Wl + bl with up = s @ Wu + bu  =>  bu @ Wl + bl constant.
        "bl_fold": jnp.asarray(params["bu"]) @ wl_t + jnp.asarray(params["bl"]),
        "A": A, "a_pad": a_pad, "H": H, "out_dim": out_dim,
    }


# ------------------------------- Forward wrapper -----------------------------

def ffn_adapter_forward(prep, hidden_states, visual, acoustic, *,
                        tm=4096, stream_dtype=None):
    """FFN_Adapter.forward (multi=True) using the Pallas kernel.

    stream_dtype: optionally cast hidden states + weights (e.g. jnp.bfloat16)
    for the HBM stream; accumulation stays f32 and output keeps the input
    dtype.
    """
    B, S, H = hidden_states.shape
    assert H == prep["H"]
    if visual.ndim == 1:
        visual = visual[None, :]
    if acoustic.ndim == 1:
        acoustic = acoustic[None, :]

    A, a_pad, out_dim = prep["A"], prep["a_pad"], prep["out_dim"]

    # Per-batch base vectors (constant over the sequence) -- tiny XLA matmuls.
    d_base = visual @ prep["wd_v"] + acoustic @ prep["wd_a"] + prep["bd"]       # (Bv, A)
    o_base = visual @ prep["wl_v"] + acoustic @ prep["wl_a"] + prep["bl_fold"]  # (Bv, out)
    if a_pad > A:
        d_base = jnp.pad(d_base, ((0, 0), (0, a_pad - A)))
    # Broadcast to the hidden-state batch (handles visual/acoustic batch == 1).
    d_base = jnp.broadcast_to(d_base.astype(jnp.float32), (B, a_pad))
    o_base = jnp.broadcast_to(o_base.astype(jnp.float32), (B, out_dim))

    out_dtype = hidden_states.dtype
    w_cat, wul = prep["w_cat"], prep["wul"]
    hid = hidden_states
    if stream_dtype is not None:
        hid = hid.astype(stream_dtype)
        w_cat = w_cat.astype(stream_dtype)
        wul = wul.astype(stream_dtype)

    act_isz = jnp.dtype(hid.dtype).itemsize
    sublane = {1: 32, 2: 16}.get(act_isz, 8)

    # Row tile: large enough to amortize per-grid-step overhead (target well
    # above 0.5 MB/step), capped by a VMEM budget derived from the actual
    # chip's VMEM capacity, with last-tile padding waste bounded.
    vmem_cap = _vmem_capacity_bytes()
    vmem_budget = min(vmem_cap * 3 // 4, 100 << 20)
    w_isz = jnp.dtype(w_cat.dtype).itemsize
    weights_bytes = 2 * (H * (a_pad + out_dim) + a_pad * out_dim) * w_isz
    per_row = (2 * (H * act_isz + out_dim * jnp.dtype(out_dtype).itemsize)
               + 2 * (a_pad + out_dim) * 4)
    avail = max(vmem_budget - weights_bytes - (6 << 20), 1 << 20)
    tm_cap = max(sublane, (avail // per_row) // sublane * sublane)
    tm_target = max(sublane, min(tm, tm_cap))

    S8 = _round_up(S, sublane)
    n_tiles = -(-S8 // tm_target)
    # v7x megacore: guarantee >= 2 parallel grid steps when the sequence
    # allows it, so a single-batch call still feeds both TensorCores.
    if B * n_tiles < 2 and S8 >= 2 * sublane:
        n_tiles = 2
    # Bound last-tile padding waste: re-derive tm from ceil(S/n_tiles).
    tm_eff = _round_up(-(-S8 // n_tiles), sublane)
    S_pad = _round_up(S, tm_eff)

    if S_pad != S:
        hid = jnp.pad(hid, ((0, 0), (0, S_pad - S), (0, 0)))

    out = _ffn_adapter_pallas(
        hid,
        d_base.reshape(B, 1, a_pad),
        o_base.reshape(B, 1, out_dim),
        w_cat, wul,
        tm=tm_eff, out_dtype=out_dtype)
    return out[:, :S, :]


# ------------------------------- Pure-JAX reference --------------------------

def ffn_adapter_reference(params, hidden_states, visual, acoustic):
    """Faithful pure-JAX reimplementation of the PyTorch forward (multi=True)."""
    B, S, H = hidden_states.shape
    if visual.ndim == 1:
        visual = visual[None, :]
    if acoustic.ndim == 1:
        acoustic = acoustic[None, :]
    v = jnp.broadcast_to(visual[:, None, :], (visual.shape[0], S, visual.shape[1]))
    a = jnp.broadcast_to(acoustic[:, None, :], (acoustic.shape[0], S, acoustic.shape[1]))
    h = jnp.concatenate([hidden_states, v, a], axis=-1)
    down = jax.nn.sigmoid(h @ params["wd"].T + params["bd"])
    up = down @ params["wu"].T + params["bu"]
    return (up + h) @ params["wl"].T + params["bl"]


# ----------------------------------- Main ------------------------------------

if __name__ == "__main__":
    # Small, shape-consistent demo config:
    #   project_hidden_size (args.hidden_size) = 32, d_vout = d_aout = 16
    #   -> in_dim = 64, adapter_size = 64, out_hidden_size = 32
    B, S = 2, 8
    H = 32
    D_V, D_A = 16, 16
    IN_DIM = H + D_V + D_A
    ADAPTER = 64
    OUT = H

    key = jax.random.PRNGKey(0)
    keys = jax.random.split(key, 8)

    hidden_states = jax.random.normal(keys[0], (B, S, H), dtype=jnp.float32)
    visual = jax.random.normal(keys[1], (B, D_V), dtype=jnp.float32)
    acoustic = jax.random.normal(keys[2], (B, D_A), dtype=jnp.float32)

    # Parameters in PyTorch layout (weight: (out_features, in_features)).
    init_range = 0.001  # adapter_initializer_range
    wd = init_range * jax.random.normal(keys[3], (ADAPTER, IN_DIM), dtype=jnp.float32)
    bd = jnp.zeros((ADAPTER,), dtype=jnp.float32)
    wu = init_range * jax.random.normal(keys[4], (IN_DIM, ADAPTER), dtype=jnp.float32)
    bu = jnp.zeros((IN_DIM,), dtype=jnp.float32)
    bound = 1.0 / np.sqrt(IN_DIM)  # adapter_linear keeps default nn.Linear init
    wl = jax.random.uniform(keys[5], (OUT, IN_DIM), minval=-bound, maxval=bound,
                            dtype=jnp.float32)
    bl = jax.random.uniform(keys[6], (OUT,), minval=-bound, maxval=bound,
                            dtype=jnp.float32)

    params = {"wd": wd, "bd": bd, "wu": wu, "bu": bu, "wl": wl, "bl": bl}

    # One-time weight preparation (transpose / split / fold / fuse).
    prep = prepare_ffn_adapter_params(params, H, D_V, D_A)
    ref = ffn_adapter_reference(params, hidden_states, visual, acoustic)

    # f32 streaming path.
    out = ffn_adapter_forward(prep, hidden_states, visual, acoustic)
    out = jax.block_until_ready(out)
    np.testing.assert_allclose(np.asarray(out), np.asarray(ref), rtol=1e-4, atol=1e-4)
    assert out.shape == (B, S, OUT)

    # bf16 streaming path (f32 accumulation), looser tolerance.
    out_bf16 = ffn_adapter_forward(prep, hidden_states, visual, acoustic,
                                   stream_dtype=jnp.bfloat16)
    out_bf16 = jax.block_until_ready(out_bf16)
    np.testing.assert_allclose(np.asarray(out_bf16), np.asarray(ref),
                               rtol=3e-2, atol=3e-2)

    # TODO(synk): the visualize=True branch (t-SNE/PCA matplotlib dumps) is
    # host-side plotting with no Pallas equivalent and is not implemented.
    print("KERNEL_OK")
</pallas_src>

<mosaic_0001>
module attributes {stable_mosaic.version = 11 : i64} {
  func.func @_ffn_adapter_kernel(%arg0: i32, %arg1: i32, %arg2: memref<1x8x32xf32, #tpu.memory_space<vmem>>, %arg3: memref<1x1x128xf32, #tpu.memory_space<vmem>>, %arg4: memref<1x1x32xf32, #tpu.memory_space<vmem>>, %arg5: memref<32x160xf32, #tpu.memory_space<vmem>>, %arg6: memref<128x32xf32, #tpu.memory_space<vmem>>, %arg7: memref<1x8x32xf32, #tpu.memory_space<vmem>>) attributes {dimension_semantics = [#tpu.dimension_semantics<parallel>, #tpu.dimension_semantics<parallel>], iteration_bounds = array<i64: 2, 1>, scalar_prefetch = 0 : i64, scratch_operands = 0 : i64, tpu.core_type = #tpu.core_type<tc>, window_params = [{transform_indices = @transform_0, window_bounds = array<i64: 1, 8, 32>}, {transform_indices = @transform_1, window_bounds = array<i64: 1, 1, 128>}, {transform_indices = @transform_2, window_bounds = array<i64: 1, 1, 32>}, {pipeline_mode = #tpu.pipeline_mode<synchronous>, transform_indices = @transform_3, window_bounds = array<i64: 32, 160>}, {pipeline_mode = #tpu.pipeline_mode<synchronous>, transform_indices = @transform_4, window_bounds = array<i64: 128, 32>}, {transform_indices = @transform_5, window_bounds = array<i64: 1, 8, 32>}]} {
    %c0 = arith.constant 0 : index
    %c0_0 = arith.constant 0 : index
    %c0_1 = arith.constant 0 : index
    %0 = vector.load %arg2[%c0, %c0_0, %c0_1] : memref<1x8x32xf32, #tpu.memory_space<vmem>>, vector<1x8x32xf32>
    %1 = vector.shape_cast %0 : vector<1x8x32xf32> to vector<8x32xf32>
    %c0_2 = arith.constant 0 : index
    %c0_3 = arith.constant 0 : index
    %2 = vector.load %arg5[%c0_2, %c0_3] : memref<32x160xf32, #tpu.memory_space<vmem>>, vector<32x160xf32>
    %cst = arith.constant dense<0.000000e+00> : vector<8x160xf32>
    %3 = tpu.matmul %1, %2, %cst {dimension_numbers = #tpu.dot_dimension_numbers<[1], [0], [0], [1], [0, 0, 1, 1], [], []>} : vector<8x32xf32>, vector<32x160xf32>, vector<8x160xf32> -> vector<8x160xf32>
    %4 = vector.extract_strided_slice %3 {offsets = [0, 0], sizes = [8, 128], strides = [1, 1]} : vector<8x160xf32> to vector<8x128xf32>
    %c0_4 = arith.constant 0 : index
    %c0_5 = arith.constant 0 : index
    %c0_6 = arith.constant 0 : index
    %5 = vector.load %arg3[%c0_4, %c0_5, %c0_6] : memref<1x1x128xf32, #tpu.memory_space<vmem>>, vector<1x1x128xf32>
    %6 = vector.shape_cast %5 : vector<1x1x128xf32> to vector<1x128xf32>
    %7 = vector.broadcast %6 : vector<1x128xf32> to vector<8x128xf32>
    %8 = arith.addf %4, %7 : vector<8x128xf32>
    %9 = arith.negf %8 : vector<8x128xf32>
    %10 = math.exp %9 : vector<8x128xf32>
    %cst_7 = arith.constant 1.000000e+00 : f32
    %11 = vector.broadcast %cst_7 : f32 to vector<8x128xf32>
    %12 = arith.addf %11, %10 : vector<8x128xf32>
    %13 = arith.divf %11, %12 : vector<8x128xf32>
    %c0_8 = arith.constant 0 : index
    %c0_9 = arith.constant 0 : index
    %14 = vector.load %arg6[%c0_8, %c0_9] : memref<128x32xf32, #tpu.memory_space<vmem>>, vector<128x32xf32>
    %cst_10 = arith.constant dense<0.000000e+00> : vector<8x32xf32>
    %15 = tpu.matmul %13, %14, %cst_10 {dimension_numbers = #tpu.dot_dimension_numbers<[1], [0], [0], [1], [0, 0, 1, 1], [], []>} : vector<8x128xf32>, vector<128x32xf32>, vector<8x32xf32> -> vector<8x32xf32>
    %16 = vector.extract_strided_slice %3 {offsets = [0, 128], sizes = [8, 32], strides = [1, 1]} : vector<8x160xf32> to vector<8x32xf32>
    %17 = arith.addf %15, %16 : vector<8x32xf32>
    %c0_11 = arith.constant 0 : index
    %c0_12 = arith.constant 0 : index
    %c0_13 = arith.constant 0 : index
    %18 = vector.load %arg4[%c0_11, %c0_12, %c0_13] : memref<1x1x32xf32, #tpu.memory_space<vmem>>, vector<1x1x32xf32>
    %19 = vector.shape_cast %18 : vector<1x1x32xf32> to vector<1x32xf32>
    %20 = vector.broadcast %19 : vector<1x32xf32> to vector<8x32xf32>
    %21 = arith.addf %17, %20 : vector<8x32xf32>
    %c0_14 = arith.constant 0 : index
    %c0_15 = arith.constant 0 : index
    %c0_16 = arith.constant 0 : index
    %22 = vector.load %arg7[%c0_14, %c0_15, %c0_16] : memref<1x8x32xf32, #tpu.memory_space<vmem>>, vector<1x8x32xf32>
    %23 = vector.shape_cast %22 : vector<1x8x32xf32> to vector<8x32xf32>
    %24 = vector.shape_cast %21 : vector<8x32xf32> to vector<1x8x32xf32>
    tpu.vector_store %arg7[%c0_14, %c0_15, %c0_16], %24 {strides = array<i32>} : memref<1x8x32xf32, #tpu.memory_space<vmem>>, vector<1x8x32xf32>,
    return
  }
  func.func @transform_0(%arg0: i32, %arg1: i32) -> (i32, i32, i32) {
    %c0_i32 = arith.constant 0 : i32
    %c0_i32_0 = arith.constant 0 : i32
    return %arg0, %arg1, %c0_i32 : i32, i32, i32
  }
  func.func @transform_1(%arg0: i32, %arg1: i32) -> (i32, i32, i32) {
    %c0_i32 = arith.constant 0 : i32
    %c0_i32_0 = arith.constant 0 : i32
    %c0_i32_1 = arith.constant 0 : i32
    return %arg0, %c0_i32, %c0_i32_0 : i32, i32, i32
  }
  func.func @transform_2(%arg0: i32, %arg1: i32) -> (i32, i32, i32) {
    %c0_i32 = arith.constant 0 : i32
    %c0_i32_0 = arith.constant 0 : i32
    %c0_i32_1 = arith.constant 0 : i32
    return %arg0, %c0_i32, %c0_i32_0 : i32, i32, i32
  }
  func.func @transform_3(%arg0: i32, %arg1: i32) -> (i32, i32) {
    %c0_i32 = arith.constant 0 : i32
    %c0_i32_0 = arith.constant 0 : i32
    %c0_i32_1 = arith.constant 0 : i32
    return %c0_i32, %c0_i32_0 : i32, i32
  }
  func.func @transform_4(%arg0: i32, %arg1: i32) -> (i32, i32) {
    %c0_i32 = arith.constant 0 : i32
    %c0_i32_0 = arith.constant 0 : i32
    %c0_i32_1 = arith.constant 0 : i32
    return %c0_i32, %c0_i32_0 : i32, i32
  }
  func.func @transform_5(%arg0: i32, %arg1: i32) -> (i32, i32, i32) {
    %c0_i32 = arith.constant 0 : i32
    %c0_i32_0 = arith.constant 0 : i32
    return %arg0, %arg1, %c0_i32 : i32, i32, i32
  }
}

</mosaic_0001>

<bundles_post_ra>
// kernel: tpu_custom_call.1
= control target key start
LH: loop header
LB: loop body
LE: loop exit
PB: predicated region body
PF: predicated region fallthrough
CT: control target
= control target key end

     0   :  { %10 = vsyncpa [#allocation3], 0  ;;  %s871_s0 = inlined_call_operand.vmem [shape: f32[2,8,32], index: 0, kind: input, shape index: {}]   ;;  %s872_s1 = inlined_call_operand.vmem [shape: f32[2,1,128], index: 1, kind: input, shape index: {}]   ;;  %s873_s2 = inlined_call_operand.vmem [shape: f32[2,1,32], index: 2, kind: input, shape index: {}]   ;;  %s874_s3 = inlined_call_operand.vmem [shape: f32[32,160], index: 3, kind: input, shape index: {}]   ;;  %s875_s4 = inlined_call_operand.vmem [shape: f32[128,32], index: 4, kind: input, shape index: {}]   ;;  %s876_s5 = inlined_call_operand.hbm [shape: f32[2,8,32], index: 5, kind: output, shape index: {}]  }
   0x1   :  { %12 = vsyncpa [#allocation3 + $0x1], 0  ;;  %s683_s18 = smov 0   ;;  %s685_s19 = smov 0  }
   0x2   :  { %s687_s20 = smov 0   ;;  %s689_s21 = smov 0  }
   0x3   :  { %s691_s22 = smov 0   ;;  %s693_s23 = smov 0  }
   0x4 LB: > { %s498_s24 = sadd.s32 4294967295, %s651_s23   ;;  %s499_s25 = sadd.s32 4294967294, %s651_s23   ;;  %s651_s23 = sphi %s693_s23, %s18_s23   ;;  %s647_s22 = sphi %s691_s22, %s883_s22   ;;  %s643_s21 = sphi %s689_s21, %s882_s21   ;;  %s639_s20 = sphi %s687_s20, %s881_s20   ;;  %s635_s19 = sphi %s685_s19, %s880_s19   ;;  %s631_s18 = sphi %s683_s18, %s879_s18  }
   0x5   : > { %s30_s26 = sadd.s32 1, %s647_s22  ;;  %s161_s27 = sadd.s32 1, %s639_s20 }
   0x6   : > { %p32_p0 = scmp.ge.s32.totalorder %s30_s26, 2  ;;  %p171_p1 = scmp.ne.s32.totalorder %s639_s20, %s635_s19 }
   0x7   : > { %p172_p2 = scmp.eq.s32.totalorder %s498_s24, 1  ;;  %p177_p3 = scmp.ne.s32.totalorder %s635_s19, %s631_s18 }
   0x8   : > { %s885_s26 = smov (%p32_p0, %s30_s26), 0  ;;  %p178_p5 = scmp.eq.s32.totalorder %s499_s25, 1 }
   0x9   : > { %p723_p4 = por %p172_p2, %p171_p1  ;;  %s156_s29 = ssub.s32 %s647_s22, %s885_s26 }
   0xa   : > { %p502_p6 = scmp.ge.s32.totalorder %s651_s23, 1  ;;  %p159_p7 = scmp.eq.s32.totalorder %s156_s29, 0 }
   0xb   : > { %p730_p8 = por %p178_p5, %p177_p3  ;;  %p224_p9 = scmp.lt.s32.totalorder %s651_s23, 3 }
   0xc   : > { %s736_s6 = scalar_select %p159_p7, %s639_s20, %s161_s27  }
   0xd   : > { %p225_p10 = pnand %p502_p6, %p224_p9 }
   0xe   : > { %p260_p11 = scmp.lt.s32.totalorder (!%p225_p10), %s643_s21, 1  ;;  %s509_s15 = sshll.u32 (!%p225_p10), %s643_s21, 3 }
   0xf   : > { %228 = sbr.rel (%p225_p10) target bundleno = 323 (0x143), region = 40  ;;  %s404_s24 = scalar_lea.hbm (!%p225_p10), %s876_s5, %s509_s15 }
  0x10   : > { %s593_s12 = scalar_lea.hbm (!%p225_p10), %s876_s5, 16 }
  0x14   : > { %v280_v0 = vld [vmem:[%s874_s3 + $0x30] sm:$0xff]  ;;  %v278_v1 = vld [vmem:[%s874_s3 + $0x20] sm:$0xff]  ;;  %s749_s13 = scalar_select %p260_p11, %s643_s21, 1  ;;  %vm282_vm0 = vcmask 261120   ;;  %v365_v5 = vld [vmem:[%s875_s4 + $0x78] sm:$0xff] }
  0x15   : > { %298 = vmatpush.msra.mxu0 %v280_v0  ;;  %v276_v2 = vld [vmem:[%s874_s3 + $0x10] sm:$0xff]  ;;  %v274_v3 = vld [vmem:[%s874_s3] sm:$0xff]  ;;  %366 = vmatpush.msra.mxu2 %v365_v5  ;;  %v363_v7 = vld [vmem:[%s875_s4 + $0x68] sm:$0xff] }
  0x16   : > { %s504_s16 = sshll.u32 %s749_s13, 3  ;;  %s269_s25 = scalar_lea.vmem %s872_s1, %s749_s13  ;;  %v364_v6 = vld [vmem:[%s875_s4 + $0x70] sm:$0xff]  ;;  %v362_v8 = vld [vmem:[%s875_s4 + $0x60] sm:$0xff]  ;;  %v361_v9 = vld [vmem:[%s875_s4 + $0x58] sm:$0xff] }
  0x17   : > { %299 = vmatpush.msra.mxu0 %v278_v1  ;;  %s266_s7 = scalar_lea.vmem %s871_s0, %s504_s16  ;;  %367 = vmatpush.msra.mxu2 %v364_v6  ;;  %v360_v10 = vld [vmem:[%s875_s4 + $0x50] sm:$0xff]  ;;  %v359_v11 = vld [vmem:[%s875_s4 + $0x48] sm:$0xff]  ;;  %v358_v12 = vld [vmem:[%s875_s4 + $0x40] sm:$0xff] }
  0x18   : > { %v273_v4 = vld [vmem:[%s266_s7] sm:$0xff]  ;;  %v357_v13 = vld [vmem:[%s875_s4 + $0x38] sm:$0xff]  ;;  %v356_v14 = vld [vmem:[%s875_s4 + $0x30] sm:$0xff]  ;;  %s408_s7 = sshll.u32 %s404_s24, 4  ;;  %s409_s7 = int_to_ptr.hbm [resolvable:$true] %s408_s7 }
  0x19   : > { %300 = vmatpush.msra.mxu0 %v276_v2  ;;  %368 = vmatpush.msra.mxu2 %v363_v7  ;;  %v281_v15 = vld [vmem:[%s874_s3 + $0x38] sm:$0xff]  ;;  %v355_v16 = vld [vmem:[%s875_s4 + $0x28] sm:$0xff]  ;;  %v354_v17 = vld [vmem:[%s875_s4 + $0x20] sm:$0xff]  ;;  %s587_s9 = sshra.s32 %s409_s7, 4  ;;  %s588_s9 = int_to_ptr.hbm [resolvable:$true] %s587_s9 }
  0x1a   : > { %318 = vmatpush.msra.mxu1 %v281_v15  ;;  %v353_v18 = vld [vmem:[%s875_s4 + $0x18] sm:$0xff]  ;;  %v352_v19 = vld [vmem:[%s875_s4 + $0x10] sm:$0xff]  ;;  %v351_v20 = vld [vmem:[%s875_s4 + $0x8] sm:$0xff]  ;;  %s589_s21 = scalar_lea.hbm %s588_s9, 8  ;;  %p594_p1 = scmp.lt.s32.totalorder %s588_s9, %s876_s5 }
  0x1b   : > { %301 = vmatpush.msra.mxu0 %v274_v3  ;;  %369 = vmatpush.msra.mxu2 %v362_v8  ;;  %v350_v21 = vld [vmem:[%s875_s4] sm:$0xff]  ;;  %v279_v23 = vld [vmem:[%s874_s3 + $0x28] sm:$0xff]  ;;  %v277_v24 = vld [vmem:[%s874_s3 + $0x18] sm:$0xff]  ;;  %p590_p12 = scmp.ne.s32.totalorder %s588_s9, %s589_s21  ;;  %p595_p2 = scmp.lt.s32.totalorder %s593_s12, %s589_s21 }
  0x1c   : > { %505 = vmatmul.msk.f32.vlgmr.msra.gmra.mxu0 %vm282_vm0, %v273_v4  ;;  %v567_v22 = vld [vmem:[%s269_s25] ss:$0 sm:$0xff]  ;;  %319 = vmatpush.msra.mxu1 %v279_v23  ;;  %v275_v27 = vld [vmem:[%s874_s3 + $0x8] sm:$0xff]  ;;  %s272_s25 = scalar_lea.vmem %s873_s2, %s749_s13  ;;  %s257_s13 = sand.u32 1, %s635_s19  }
  0x1d   : > { %370 = vmatpush.msra.mxu2 %v361_v9  ;;  %s503_s14 = sshll.u32 %s257_s13, 3  ;;  %v568_v42 = vld [vmem:[%s272_s25] ss:$0 sm:$0xff]  ;;  %s393_s8 = scalar_lea.sflag [#allocation3], %s257_s13 }
  0x1e   : > { %320 = vmatpush.msra.mxu1 %v277_v24  ;;  %s259_s27 = scalar_lea.vmem [#allocation2], %s503_s14  ;;  %p591_p13 = pnand %p590_p12, %p723_p4 }
  0x1f   : > { %371 = vmatpush.msra.mxu2 %v360_v10  ;;  %s406_s29 = sshll.u32 %s259_s27, 4  ;;  %p596_p3 = por %p595_p2, %p594_p1  ;;  %s407_s29 = int_to_ptr.vmem [resolvable:$true] %s406_s29 }
  0x20   : > { %321 = vmatpush.msra.mxu1 %v275_v27  ;;  %p592_p0 = pneg %p591_p13 }
  0x21   : > { %372 = vmatpush.msra.mxu2 %v359_v11  ;;  %506 = vmatmul.msk.f32.vlgmr.msra.gmra.mxu1 %vm282_vm0, %v273_v4 }
  0x22   : > { %p597_p5 = pnand %p596_p3, %p592_p0 }
  0x23   : > { %373 = vmatpush.msra.mxu2 %v358_v12 }
  0x25   : > { %374 = vmatpush.msra.mxu2 %v357_v13 }
  0x27   : > { %375 = vmatpush.msra.mxu2 %v356_v14 }
  0x29   : > { %376 = vmatpush.msra.mxu2 %v355_v16 }
  0x2b   : > { %377 = vmatpush.msra.mxu2 %v354_v17 }
  0x2d   : > { %378 = vmatpush.msra.mxu2 %v353_v18 }
  0x2f   : > { %379 = vmatpush.msra.mxu2 %v352_v19 }
  0x31   : > { %380 = vmatpush.msra.mxu2 %v351_v20 }
  0x33   : > { %381 = vmatpush.msra.mxu2 %v350_v21 }
  0x99   : > { %v303_v25 = vpop.f32.mrf.mxu0 }
  0x9a   : > { %v330_v26 = vadd.f32 %v567_v22, %v303_v25 }
  0x9c   : > { %v507_v28 = vmul.f32 -1.442695, %v330_v26 }
  0x9e   : > { %569 = vpow2.f32 %v507_v28  ;;  %v323_v41 = vpop.f32.mrf.mxu1 }
  0xa4   : > { %v570_v29 = vpop.eup %569 }
  0xa5   : > { %v334_v30 = vadd.f32 1.0, %v570_v29 }
  0xa7   : > { %571 = vrcp.f32 %v334_v30  ;;  %v346_v34 = vand.u32 2147483648, %v334_v30  ;;  %v344_v36 = vand.u32 2147483647, %v334_v30  ;;  %vm340_vm2 = vweird.f32 %v334_v30 }
  0xa9   : > { %v347_v38 = vor.u32 1.1754944e-38, %v346_v34  ;;  %vm345_vm4 = vcmp.eq.f32.partialorder %v344_v36, 8.507059e+37 }
  0xad   : > { %v572_v31 = vpop.eup %571 }
  0xae   : > { %v336_v32 = vmul.f32 %v572_v31, %v334_v30  ;;  %vm341_vm1 = vweird.f32 %v572_v31 }
  0xaf   : > { %vm342_vm3 = vmor %vm340_vm2, %vm341_vm1 }
  0xb0   : > { %v337_v33 = vsub.f32 1.0, %v336_v32 }
  0xb2   : > { %v338_v35 = vmul.f32 %v572_v31, %v337_v33 }
  0xb4   : > { %v339_v37 = vadd.f32 %v572_v31, %v338_v35 }
  0xb6   : > { %v343_v39 = vsel %vm342_vm3, %v572_v31, %v339_v37 }
  0xb7   : > { %v348_v40 = vsel %vm345_vm4, %v347_v38, %v343_v39 }
  0xb8   : > { %382 = vmatmul.f32.vlgmr.msra.gmra.mxu2 %v348_v40 }
 0x13b   : > { %v383_v43 = vpop.f32.mrf.mxu2 }
 0x13c   : > { %v384_v44 = vadd.f32 %v383_v43, %v323_v41 }
 0x13e   : > { %v390_v45 = vadd.f32 %v568_v42, %v384_v44 }
 0x140   : > { %391 = vst.msk [vmem:[%s259_s27] sm:$0xff] %vm282_vm0, %v390_v45 }
 0x141   : > { %600 = shalt.err (!%p597_p5)
}
 0x142   : > { %512 = dma.vmem_to_hbm [thread:$0]  (%p723_p4), %s407_s29, 128, %s409_s7, %s393_s8  }
 0x143 PF: > { %p518_p6 = scmp.ge.s32.totalorder %s651_s23, 2  ;;  %s420_s13 = sand.u32 1, %s631_s18  }
 0x144   : > { %s421_s15 = scalar_lea.sflag [#allocation3], %s420_s13 }
 0x145   : > { %p515_p7 = pnand %p518_p6, %p730_p8 }
 0x147   : > { %p516_p9 = pneg %p515_p7 }
 0x149   : > { %626 = dma.done.wait (%p516_p9), %s421_s15, 128  }
 0x14a   : > { %628 = vsyncadd (%p516_p9), %s421_s15, 4294967168  ;;  %s18_s23 = sadd.s32 1, %s651_s23   ;;  %s879_s18 = smov %s635_s19 }
 0x14b   : > { %p15_p10 = scmp.ge.s32.totalorder %s18_s23, 4   ;;  %s880_s19 = smov %s639_s20 }
 0x14c   : > { %s881_s20 = smov %s736_s6  ;;  %s882_s21 = smov %s647_s22 }
 0x14d   : > { %s883_s22 = smov %s885_s26  ;;  %17 = sbr.rel (!%p15_p10) target bundleno = 4 (0x4), region = 81 }
 0x152   :  { %427 = vsyncpa [#allocation3], 1 }
 0x153   :  { %429 = vsyncpa [#allocation3 + $0x1], 1 }

</bundles_post_ra>
